<compile_context>
chip_gen: v7x
topology: tpu7x:2x2x1
jax: 0.10.0
libtpu: 0.0.40
codegen_flags: <defaults>
</compile_context>

<pallas_src>
import jax
import jax.numpy as jnp
from jax.experimental import pallas as pl
from jax.experimental.pallas import tpu as pltpu


_LANE = 128
_DEFAULT_BLOCK_CAP_BYTES = 4 * 1024 * 1024   # per-array block target (v5e/v6e)
_V7X_BLOCK_CAP_BYTES = 8 * 1024 * 1024       # fatter blocks on v7x (3.2 TB/s HBM)
_VMEM_LIMIT_FLOOR = 32 << 20
_VMEM_LIMIT_CEIL = 48 << 20
_MIN_GRID_STEPS = 8                          # keep pipelining + megacore engaged


def _per_block_cap_bytes():
    """Generation-aware per-array block cap."""
    cap = _DEFAULT_BLOCK_CAP_BYTES
    try:
        info = pltpu.get_tpu_info()
        vmem_cap = getattr(info, "vmem_capacity_bytes", None)
        # v7x: 64 MiB VMEM/TC but ~3.2 TB/s HBM -> 8 MiB blocks amortize the
        # ~0.35 us/step overhead; total footprint stays well under 64 MiB.
        if vmem_cap is not None and vmem_cap <= (96 << 20):
            cap = _V7X_BLOCK_CAP_BYTES
    except Exception:
        cap = _DEFAULT_BLOCK_CAP_BYTES
    return cap


def _round_up(v, m):
    return (v + m - 1) // m * m


def _largest_divisor_leq(n, cap):
    cap = max(1, min(cap, n))
    for d in range(cap, 0, -1):
        if n % d == 0:
            return d
    return 1


def _spatial_attn_kernel(x_ref, w_ref, o_ref):
    """y = x * sigmoid(sum_c w[c] * x[c]).

    x_ref: (nb, C, T)   nb batch elements, all channels, a lane tile of pixels
    w_ref: (C, 1)       f32 squeeze-conv weights, channels on sublanes
    o_ref: (nb, C, T)
    """
    x = x_ref[...]                                            # (nb, C, T)
    w = w_ref[...]                                            # (C, 1) f32
    # 1x1 conv == per-pixel dot over channels, f32 accumulation.
    z = jnp.sum(x.astype(jnp.float32) * w[None, :, :], axis=1, keepdims=True)
    z = jax.nn.sigmoid(z)                                     # (nb, 1, T)
    o_ref[...] = x * z.astype(x.dtype)                        # broadcast over C


def spatial_attention_2d(x, weight, *, donate_input=False):
    """SpatialAttention2d forward: y = x * sigmoid(conv1x1_{C->1}(x)).

    x: (N, C, H, W); weight: (1, C, 1, 1) (PyTorch Conv2d weight, bias=False).
    """
    N, C, H, W = x.shape
    HW = H * W
    itemsize = jnp.dtype(x.dtype).itemsize

    # ---- static tile selection (bandwidth-bound: make grid steps fat) -------
    cap = _per_block_cap_bytes()
    if itemsize < 4:
        # The kernel builds an f32 intermediate over the whole block; halve the
        # cap for sub-f32 inputs so the temporary fits the VMEM budget.
        cap //= 2

    full_row_bytes = C * HW * itemsize
    if full_row_bytes <= cap:
        # Full spatial extent per block (no (8,128) constraint, no padding);
        # pack several batch elements per step so blocks stay near the cap.
        tile_hw = HW
        nb = _largest_divisor_leq(N, max(1, cap // max(1, full_row_bytes)))
    else:
        nb = 1
        if HW <= _LANE:
            tile_hw = HW
        else:
            lanes = (cap // (C * itemsize)) // _LANE * _LANE
            tile_hw = max(_LANE, lanes)      # multiple of 128; ragged tail masked

    # Keep enough grid steps for software pipelining / megacore sharding.
    def _steps(nb_, tile_):
        return (N // nb_) * pl.cdiv(HW, tile_)

    while nb > 1 and _steps(nb, tile_hw) < _MIN_GRID_STEPS:
        nb = _largest_divisor_leq(N, max(1, nb // 2))
    while tile_hw > _LANE and _steps(nb, tile_hw) < _MIN_GRID_STEPS:
        new_tile = max(_LANE, ((tile_hw // 2) // _LANE) * _LANE)
        if new_tile == tile_hw:
            break
        tile_hw = new_tile

    # ---- VMEM budget ---------------------------------------------------------
    block_bytes = nb * C * tile_hw * itemsize
    f32_extra = 0 if itemsize >= 4 else 2 * nb * C * tile_hw * 4
    # x block + out block, double-buffered, plus f32 intermediates and slack.
    vmem_needed = 4 * block_bytes + f32_extra + (2 << 20)
    if vmem_needed > _VMEM_LIMIT_CEIL:
        # TODO(synk): add a channel-split (two-pass) fallback for extremely large C.
        raise ValueError(
            f"SpatialAttention2d: block of {block_bytes} bytes (C={C}, tile={tile_hw}) "
            f"exceeds the {_VMEM_LIMIT_CEIL >> 20} MiB VMEM budget.")
    vmem_limit = int(min(max(vmem_needed, _VMEM_LIMIT_FLOOR), _VMEM_LIMIT_CEIL))

    # ---- data prep (free reshapes only; no pad, no slice) --------------------
    x_flat = x.reshape(N, C, HW)
    # Weight stays f32 (matches PyTorch conv weight precision); channels on the
    # sublane axis so no per-step relayout inside the kernel.
    w_col = weight.reshape(C, 1).astype(jnp.float32)

    grid = (N // nb, pl.cdiv(HW, tile_hw))
    aliases = {0: 0} if donate_input else {}

    out_flat = pl.pallas_call(
        _spatial_attn_kernel,
        out_shape=jax.ShapeDtypeStruct((N, C, HW), x.dtype),
        grid_spec=pltpu.PrefetchScalarGridSpec(
            num_scalar_prefetch=0,
            grid=grid,
            in_specs=[
                pl.BlockSpec((nb, C, tile_hw), lambda n, s: (n, 0, s)),
                pl.BlockSpec((C, 1), lambda n, s: (0, 0)),   # resident f32 weight
            ],
            out_specs=pl.BlockSpec((nb, C, tile_hw), lambda n, s: (n, 0, s)),
        ),
        compiler_params=pltpu.CompilerParams(
            dimension_semantics=("parallel", "parallel"),
            vmem_limit_bytes=vmem_limit,
        ),
        input_output_aliases=aliases,
    )(x_flat, w_col)

    return out_flat.reshape(N, C, H, W)


def spatial_attention_2d_ref(x, weight):
    """Pure-JAX reference matching the PyTorch module."""
    w = weight.reshape(1, -1, 1, 1).astype(jnp.float32)       # (1, C, 1, 1)
    z = jnp.sum(x.astype(jnp.float32) * w, axis=1, keepdims=True)
    z = jax.nn.sigmoid(z)
    return x * z.astype(x.dtype)


if __name__ == "__main__":
    key = jax.random.PRNGKey(0)
    kx, kw, kx2, kw2 = jax.random.split(key, 4)

    # Canonical small shape for the module (128-multiple spatial size).
    N, C, H, W = 2, 4, 16, 16
    x = jax.random.normal(kx, (N, C, H, W), dtype=jnp.float32)
    weight = jax.random.normal(kw, (1, C, 1, 1), dtype=jnp.float32) * 0.1

    out = jax.block_until_ready(spatial_attention_2d(x, weight))
    ref = spatial_attention_2d_ref(x, weight)
    assert out.shape == (N, C, H, W)
    assert jnp.allclose(out, ref, atol=1e-5, rtol=1e-5), "mismatch vs reference"

    # Ragged spatial size (14x14 = 196 lanes): exercises the masked trailing
    # lane tile with no host-side pad/slice.
    N2, C2, H2, W2 = 2, 32, 14, 14
    x2 = jax.random.normal(kx2, (N2, C2, H2, W2), dtype=jnp.float32)
    weight2 = jax.random.normal(kw2, (1, C2, 1, 1), dtype=jnp.float32) * 0.05

    out2 = jax.block_until_ready(spatial_attention_2d(x2, weight2))
    ref2 = spatial_attention_2d_ref(x2, weight2)
    assert out2.shape == (N2, C2, H2, W2)
    assert jnp.allclose(out2, ref2, atol=1e-5, rtol=1e-5), "ragged-HW mismatch vs reference"

    print("KERNEL_OK")
</pallas_src>

<mosaic_0001>
module attributes {stable_mosaic.version = 11 : i64} {
  func.func @_spatial_attn_kernel(%arg0: i32, %arg1: i32, %arg2: memref<1x4x128xf32, #tpu.memory_space<vmem>>, %arg3: memref<4x1xf32, #tpu.memory_space<vmem>>, %arg4: memref<1x4x128xf32, #tpu.memory_space<vmem>>) attributes {dimension_semantics = [#tpu.dimension_semantics<parallel>, #tpu.dimension_semantics<parallel>], iteration_bounds = array<i64: 2, 2>, scalar_prefetch = 0 : i64, scratch_operands = 0 : i64, tpu.core_type = #tpu.core_type<tc>, window_params = [{transform_indices = @transform_0, window_bounds = array<i64: 1, 4, 128>}, {pipeline_mode = #tpu.pipeline_mode<synchronous>, transform_indices = @transform_1, window_bounds = array<i64: 4, 1>}, {transform_indices = @transform_2, window_bounds = array<i64: 1, 4, 128>}]} {
    %c0 = arith.constant 0 : index
    %c0_0 = arith.constant 0 : index
    %c0_1 = arith.constant 0 : index
    %0 = vector.load %arg2[%c0, %c0_0, %c0_1] : memref<1x4x128xf32, #tpu.memory_space<vmem>>, vector<1x4x128xf32>
    %c0_2 = arith.constant 0 : index
    %c0_3 = arith.constant 0 : index
    %1 = vector.load %arg3[%c0_2, %c0_3] : memref<4x1xf32, #tpu.memory_space<vmem>>, vector<4x1xf32>
    %2 = vector.shape_cast %1 : vector<4x1xf32> to vector<1x4x1xf32>
    %3 = vector.broadcast %2 : vector<1x4x1xf32> to vector<1x4x128xf32>
    %4 = arith.mulf %0, %3 : vector<1x4x128xf32>
    %cst = arith.constant dense<0.000000e+00> : vector<1x128xf32>
    %5 = vector.multi_reduction <add>, %4, %cst [1] : vector<1x4x128xf32> to vector<1x128xf32>
    %6 = vector.shape_cast %5 : vector<1x128xf32> to vector<1x1x128xf32>
    %7 = arith.negf %6 : vector<1x1x128xf32>
    %8 = math.exp %7 : vector<1x1x128xf32>
    %cst_4 = arith.constant 1.000000e+00 : f32
    %9 = vector.broadcast %cst_4 : f32 to vector<1x1x128xf32>
    %10 = arith.addf %9, %8 : vector<1x1x128xf32>
    %11 = arith.divf %9, %10 : vector<1x1x128xf32>
    %12 = vector.broadcast %11 : vector<1x1x128xf32> to vector<1x4x128xf32>
    %13 = arith.mulf %0, %12 : vector<1x4x128xf32>
    %c0_5 = arith.constant 0 : index
    %c0_6 = arith.constant 0 : index
    %c0_7 = arith.constant 0 : index
    %14 = vector.load %arg4[%c0_5, %c0_6, %c0_7] : memref<1x4x128xf32, #tpu.memory_space<vmem>>, vector<1x4x128xf32>
    tpu.vector_store %arg4[%c0_5, %c0_6, %c0_7], %13 {strides = array<i32>} : memref<1x4x128xf32, #tpu.memory_space<vmem>>, vector<1x4x128xf32>,
    return
  }
  func.func @transform_0(%arg0: i32, %arg1: i32) -> (i32, i32, i32) {
    %c0_i32 = arith.constant 0 : i32
    %c0_i32_0 = arith.constant 0 : i32
    return %arg0, %c0_i32, %arg1 : i32, i32, i32
  }
  func.func @transform_1(%arg0: i32, %arg1: i32) -> (i32, i32) {
    %c0_i32 = arith.constant 0 : i32
    %c0_i32_0 = arith.constant 0 : i32
    %c0_i32_1 = arith.constant 0 : i32
    return %c0_i32, %c0_i32_0 : i32, i32
  }
  func.func @transform_2(%arg0: i32, %arg1: i32) -> (i32, i32, i32) {
    %c0_i32 = arith.constant 0 : i32
    %c0_i32_0 = arith.constant 0 : i32
    return %arg0, %c0_i32, %arg1 : i32, i32, i32
  }
}

</mosaic_0001>

<bundles_post_ra>
// kernel: tpu_custom_call.1
= control target key start
LH: loop header
LB: loop body
LE: loop exit
PB: predicated region body
PF: predicated region fallthrough
CT: control target
= control target key end

     0   :  { %7 = vsyncpa [#allocation3], 0  ;;  %s747_s0 = inlined_call_operand.hbm [shape: f32[2,4,256], index: 0, kind: input, shape index: {}]   ;;  %s748_s1 = inlined_call_operand.vmem [shape: f32[4,1], index: 1, kind: input, shape index: {}]   ;;  %s749_s2 = inlined_call_operand.hbm [shape: f32[2,4,256], index: 2, kind: output, shape index: {}]  }
   0x1   :  { %9 = vsyncpa [#allocation3 + $0x1], 0 }
   0x2   :  { %10 = vsyncpa [#allocation4], 0 }
   0x3   :  { %12 = vsyncpa [#allocation4 + $0x1], 0  ;;  %s550_s9 = smov 0   ;;  %s552_s10 = smov 0  }
   0x4   :  { %s554_s11 = smov 0   ;;  %s556_s12 = smov 0  }
   0x5   :  { %s558_s13 = smov 0   ;;  %s560_s14 = smov 0  }
   0x6   :  { %s562_s15 = smov 0   ;;  %s564_s16 = smov 0  }
   0x7 LB: > { %s302_s17 = sadd.s32 4294967295, %s530_s16   ;;  %s303_s18 = sadd.s32 4294967294, %s530_s16   ;;  %s530_s16 = sphi %s564_s16, %s18_s16   ;;  %s526_s15 = sphi %s562_s15, %s766_s15   ;;  %s522_s14 = sphi %s560_s14, %s765_s14   ;;  %s518_s13 = sphi %s558_s13, %s764_s13   ;;  %s514_s12 = sphi %s556_s12, %s763_s12   ;;  %s510_s11 = sphi %s554_s11, %s762_s11   ;;  %s506_s10 = sphi %s552_s10, %s761_s10   ;;  %s502_s9 = sphi %s550_s9, %s760_s9  }
   0x8   : > { %s27_s19 = sadd.s32 1, %s522_s14  ;;  %s30_s20 = sadd.s32 1, %s526_s15 }
   0x9   : > { %p28_p0 = scmp.ge.s32.totalorder %s27_s19, 2  ;;  %s39_s21 = sadd.s32 1, %s510_s11 }
   0xa   : > { %p46_p1 = scmp.ne.s32.totalorder %s510_s11, %s506_s10  ;;  %p47_p2 = scmp.eq.s32.totalorder %s530_s16, 0 }
   0xb   : > { %s768_s19 = smov (%p28_p0, %s27_s19), 0  ;;  %s770_s20 = smov (!%p28_p0, %s30_s20), %s526_s15 }
   0xc   : > { %s35_s22 = ssub.s32 %s522_s14, %s768_s19  ;;  %p603_p3 = por %p47_p2, %p46_p1 }
   0xd   : > { %p32_p4 = scmp.ge.s32.totalorder %s770_s20, 2  ;;  %p52_p5 = scmp.ne.s32.totalorder %s506_s10, %s502_s9 }
   0xe   : > { %p53_p6 = scmp.eq.s32.totalorder %s302_s17, 0  ;;  %p99_p7 = scmp.eq.s32.totalorder %s302_s17, 3 }
   0xf   : > { %s772_s20 = smov (%p32_p4, %s770_s20), 0  ;;  %p105_p10 = scmp.eq.s32.totalorder %s303_s18, 3 }
  0x10   : > { %p611_p8 = por %p53_p6, %p52_p5  ;;  %p615_p9 = por %p99_p7, %p46_p1 }
  0x11   : > { %s34_s26 = ssub.s32 %s526_s15, %s772_s20  ;;  %p621_p12 = por %p105_p10, %p52_p5 }
  0x12   : > { %s753_s25 = scalar_select %p615_p9, 1, 0 }
  0x13   : > { %s36_s27 = sor.u32 %s35_s22, %s34_s26  ;;  %p330_p13 = scmp.lt.s32.totalorder %s530_s16, 4 }
  0x14   : > { %p37_p11 = scmp.eq.s32.totalorder %s36_s27, 0  ;;  %s128_s29 = sand.u32 1, %s510_s11  }
  0x15   : > { %s754_s28 = scalar_select %p621_p12, 1, 0 }
  0x16   : > { %s628_s30 = scalar_select %p37_p11, %s510_s11, %s39_s21  }
  0x17   : > { %s306_s3 = sshll.u32 %s128_s29, 2  ;;  %s307_s4 = sshll.u32 %s526_s15, 1 }
  0x18   : > { %s137_s5 = sadd.s32 %s522_s14, %s307_s4  ;;  %s132_s6 = scalar_lea.vmem [#allocation2], %s306_s3 }
  0x19   : > { %s141_s7 = sshll.u32 %s132_s6, 4  ;;  %s308_s8 = sshll.u32 %s137_s5, 6  ;;  %s632_s7 = int_to_ptr.vmem [resolvable:$true] %s141_s7 }
  0x1a   : > { %s637_s22 = scalar_lea.hbm %s747_s0, %s308_s8  ;;  %p641_p0 = pnand %p330_p13, %p603_p3 }
  0x1b   : > { %s129_s26 = scalar_lea.sflag [#allocation3], %s128_s29  ;;  %s402_s27 = scalar_lea.hbm %s637_s22, 64 }
  0x1c   : > { %p403_p4 = scmp.ne.s32.totalorder %s637_s22, %s402_s27  ;;  %p404_p5 = pneg %p641_p0 }
  0x1d   : > { %s407_s4 = scalar_lea.hbm %s747_s0, 256  ;;  %p408_p3 = scmp.lt.u32.totalorder %s637_s22, %s747_s0 }
  0x1e   : > { %p405_p6 = pnand %p404_p5, %p403_p4  ;;  %p409_p10 = scmp.lt.u32.totalorder %s407_s4, %s402_s27 }
  0x1f   : > { %p411_p13 = scmp.lt.u32.totalorder %s402_s27, %s637_s22 }
  0x20   : > { %p406_p7 = pneg %p405_p6  ;;  %p410_p11 = por %p409_p10, %p408_p3 }
  0x22   : > { %p412_p1 = por %p411_p13, %p410_p11 }
  0x24   : > { %p413_p2 = pnand %p412_p1, %p406_p7 }
  0x26   : > { %416 = shalt.err (!%p413_p2)
}
  0x27   : > { %s417_s29 = scalar_lea.vmem %s632_s7, 64  ;;  %s532_s8 = smov [#allocation2]  }
  0x28   : > { %p418_p4 = scmp.ne.s32.totalorder %s632_s7, %s417_s29  ;;  %s422_s17 = sshll.u32 %s532_s8, 4  ;;  %s423_s17 = int_to_ptr.vmem [resolvable:$false] %s422_s17 }
  0x29   : > { %s424_s18 = scalar_lea.vmem %s423_s17, 128  ;;  %p425_p9 = scmp.lt.s32.totalorder %s632_s7, %s423_s17 }
  0x2a   : > { %p420_p6 = pnand %p418_p4, %p404_p5  ;;  %p426_p3 = scmp.lt.s32.totalorder %s424_s18, %s417_s29 }
  0x2c   : > { %p421_p12 = pneg %p420_p6  ;;  %p427_p10 = por %p426_p3, %p425_p9 }
  0x2e   : > { %p428_p11 = pnand %p427_p10, %p421_p12 }
  0x30   : > { %431 = shalt.err (!%p428_p11)
}
  0x31   : > { %325 = dma.hbm_to_vmem [thread:$0]  (!%p641_p0), %s637_s22, 64, %s632_s7, %s129_s26  }
  0x32   : > { %p756_p1 = scmp.lt.s32.totalorder %s530_s16, 5  ;;  %p757_p2 = scmp.ge.s32.totalorder %s530_s16, 1 }
  0x34   : > { %p147_p5 = pnand %p757_p2, %p756_p1 }
  0x35   : > { %s677_s27 = sand.u32 (!%p147_p5), 1, %s506_s10  }
  0x36   : > { %150 = sbr.rel (%p147_p5) target bundleno = 249 (0xf9), region = 28  ;;  %s310_s23 = sshll.u32 (!%p147_p5), %s677_s27, 2 }
  0x37   : > { %s153_s3 = scalar_lea.sflag (!%p147_p5), [#allocation3], %s677_s27  ;;  %s156_s4 = scalar_lea.vmem (!%p147_p5), [#allocation2], %s310_s23 }
  0x3d   : > { %493 = dma.done.wait (%p611_p8), %s153_s3, 64  }
  0x3e   : > { %495 = vsyncadd (%p611_p8), %s153_s3, 4294967232  ;;  %v533_v0 = vmov 0   ;;  %v178_v1 = vld [vmem:[%s748_s1] sm:$0xf]  ;;  %vm185_vm0 = vcmask 1043456   ;;  %s314_s24 = sshll.u32 %s518_s13, 1 }
  0x3f   : > { %397 = vset.pattern.permute.xlu0 %v533_v0  ;;  %v177_v2 = vld [vmem:[%s156_s4] sm:$0xf]  ;;  %s213_s21 = sadd.s32 %s514_s12, %s314_s24  ;;  %s176_s5 = scalar_lea.vmem [#allocation5], %s310_s23 }
  0x40   : > { %181 = vperm.xlu0 %397, %v178_v1   ;;  %s315_s26 = sshll.u32 %s213_s21, 6  ;;  %s217_s6 = sshll.u32 %s176_s5, 4  ;;  %s695_s6 = int_to_ptr.vmem [resolvable:$true] %s217_s6 }
  0x41   : > { %s693_s17 = scalar_lea.hbm %s749_s2, %s315_s26  ;;  %s202_s18 = scalar_lea.sflag [#allocation4], %s677_s27 }
  0x42   : > { %s432_s3 = scalar_lea.vmem %s695_s6, 64  ;;  %p758_p9 = scmp.ne.s32.totalorder %s753_s25, 0 }
  0x43   : > { %p433_p8 = scmp.ne.s32.totalorder %s695_s6, %s432_s3  ;;  %s534_s12 = smov [#allocation5]  }
  0x44   : > { %s436_s13 = sshll.u32 %s534_s12, 4  ;;  %s437_s13 = int_to_ptr.vmem [resolvable:$false] %s436_s13 }
  0x45   : > { %p434_p12 = pnand %p433_p8, %p758_p9  ;;  %s438_s23 = scalar_lea.vmem %s437_s13, 128 }
  0x46   : > { %p439_p7 = scmp.lt.s32.totalorder %s695_s6, %s437_s13  ;;  %p440_p13 = scmp.lt.s32.totalorder %s438_s23, %s432_s3 }
  0x47   : > { %p435_p0 = pneg %p434_p12 }
  0x48   : > { %p441_p4 = por %p440_p13, %p439_p7 }
  0x4a   : > { %p442_p6 = pnand %p441_p4, %p435_p0 }
  0xbf   : > { %v182_v3 = vpop.permute.xlu0 %181 }
  0xc0   : > { %v184_v4 = vmul.f32 %v182_v3, %v177_v2 }
  0xc2   : > { %v186_v5 = vsel %vm185_vm0, %v184_v4, 0.0 }
  0xc3   : > { %v187_v6 = vrot.slane %v186_v5, 4 }
  0xc5   : > { %v188_v7 = vadd.f32 %v187_v6, %v186_v5 }
  0xc7   : > { %v189_v8 = vrot.slane %v188_v7, 2 }
  0xc9   : > { %v190_v9 = vadd.f32 %v189_v8, %v188_v7 }
  0xcb   : > { %v191_v10 = vrot.slane %v190_v9, 1 }
  0xcd   : > { %v192_v11 = vadd.f32 %v191_v10, %v190_v9 }
  0xcf   : > { %v312_v12 = vmul.f32 -1.442695, %v192_v11 }
  0xd1   : > { %398 = vpow2.f32 %v312_v12 }
  0xdb   : > { %v399_v13 = vpop.eup %398 }
  0xdc   : > { %v196_v14 = vadd.f32 1.0, %v399_v13 }
  0xde   : > { %400 = vrcp.f32 %v196_v14 }
  0xe8   : > { %v401_v15 = vpop.eup %400 }
  0xe9   : > { %v199_v16 = vmul.f32 %v401_v15, %v177_v2 }
  0xeb   : > { %200 = vst [vmem:[%s176_s5] sm:$0xf] %v199_v16 }
  0xec   : > { %445 = shalt.err (!%p442_p6)
}
  0xed   : > { %s446_s27 = scalar_lea.hbm %s693_s17, 64  ;;  %s450_s22 = scalar_lea.hbm %s749_s2, 256 }
  0xee   : > { %p447_p3 = scmp.ne.s32.totalorder %s693_s17, %s446_s27  ;;  %p451_p1 = scmp.lt.u32.totalorder %s693_s17, %s749_s2 }
  0xef   : > { %p452_p2 = scmp.lt.u32.totalorder %s450_s22, %s446_s27  ;;  %p454_p8 = scmp.lt.u32.totalorder %s446_s27, %s693_s17 }
  0xf0   : > { %p448_p10 = pnand %p447_p3, %p758_p9 }
  0xf1   : > { %p453_p5 = por %p452_p2, %p451_p1 }
  0xf2   : > { %p449_p11 = pneg %p448_p10 }
  0xf3   : > { %p455_p12 = por %p454_p8, %p453_p5 }
  0xf5   : > { %p456_p0 = pnand %p455_p12, %p449_p11 }
  0xf7   : > { %459 = shalt.err (!%p456_p0)
}
  0xf8   : > { %320 = dma.vmem_to_hbm [thread:$0]  (%p758_p9), %s695_s6, 64, %s693_s17, %s202_s18  }
  0xf9 PF: > { %p331_p7 = scmp.ge.s32.totalorder %s530_s16, 2  ;;  %s229_s26 = sand.u32 1, %s502_s9  }
  0xfa   : > { %p759_p13 = scmp.ne.s32.totalorder %s754_s28, 0  ;;  %s230_s5 = scalar_lea.sflag [#allocation4], %s229_s26 }
  0xfc   : > { %p327_p4 = pnand %p331_p7, %p759_p13 }
  0xfe   : > { %497 = dma.done.wait (!%p327_p4), %s230_s5, 64  }
  0xff   : > { %499 = vsyncadd (!%p327_p4), %s230_s5, 4294967232  ;;  %s18_s16 = sadd.s32 1, %s530_s16   ;;  %s760_s9 = smov %s506_s10 }
 0x100   : > { %p15_p6 = scmp.ge.s32.totalorder %s18_s16, 6   ;;  %s761_s10 = smov %s510_s11 }
 0x101   : > { %s762_s11 = smov %s628_s30  ;;  %s763_s12 = smov %s522_s14 }
 0x102   : > { %s764_s13 = smov %s526_s15  ;;  %s765_s14 = smov %s768_s19 }
 0x103   : > { %s766_s15 = smov %s772_s20  ;;  %17 = sbr.rel (!%p15_p6) target bundleno = 7 (0x7), region = 73 }
 0x10a   :  { %235 = vsyncpa [#allocation3], 1 }
 0x10b   :  { %237 = vsyncpa [#allocation3 + $0x1], 1 }
 0x10c   :  { %238 = vsyncpa [#allocation4], 1 }
 0x10d   :  { %240 = vsyncpa [#allocation4 + $0x1], 1 }

</bundles_post_ra>
